<compile_context>
chip_gen: v6e
topology: v6e:2x2x1
jax: 0.10.0
libtpu: 0.0.40
codegen_flags: <defaults>
</compile_context>

<pallas_src>
import math
from functools import partial

import jax
import jax.numpy as jnp
from jax import lax
from jax.experimental import pallas as pl
from jax.experimental.pallas import tpu as pltpu


# -----------------------------------------------------------------------------
# Conv block kernel: conv3x3(pad=1) + BatchNorm(train stats) + ReLU + MaxPool(2)
# Single grid step, one MXU matmul covering all four 2x2-pool quadrants.
# -----------------------------------------------------------------------------
def _conv_block_kernel(xq_ref, w_ref, g_ref, beta_ref, o_ref, *, n_px, q_pad):
    """xq_ref: (Cin*9, 4*q_pad) quadrant-concatenated im2col (cols zero-padded to
    a multiple of 128 per quadrant), w_ref: (Cout, Cin*9), g/beta: (Cout, 1),
    o_ref: (Cout, q_pad)."""
    # One MXU matmul for all four pool quadrants.  The conv bias is dropped:
    # train-mode BatchNorm subtracts the per-channel batch mean, so a constant
    # per-channel bias cancels exactly (dead compute).
    y = jnp.dot(w_ref[...], xq_ref[...], preferred_element_type=jnp.float32)

    # BatchNorm2d (training): one-pass batch stats, var = E[x^2] - mean^2.
    # Zero-padded columns produce y == 0 and contribute nothing to either sum;
    # divide by the true pixel count n_px = B*H*W.
    inv_n = 1.0 / float(n_px)
    mean = jnp.sum(y, axis=1, keepdims=True) * inv_n
    ex2 = jnp.sum(y * y, axis=1, keepdims=True) * inv_n
    var = ex2 - mean * mean
    scale = g_ref[...] * lax.rsqrt(var + 1e-5)
    shift = beta_ref[...] - mean * scale

    # BN + ReLU, then MaxPool2d(2) == elementwise max of the four quadrant
    # column blocks (lane-aligned static slices, q_pad is a multiple of 128).
    z = jnp.maximum(y * scale + shift, 0.0)
    q0 = z[:, 0 * q_pad:1 * q_pad]
    q1 = z[:, 1 * q_pad:2 * q_pad]
    q2 = z[:, 2 * q_pad:3 * q_pad]
    q3 = z[:, 3 * q_pad:4 * q_pad]
    o_ref[...] = jnp.maximum(jnp.maximum(q0, q1), jnp.maximum(q2, q3))


def _im2col_pool_quadrants(x, q_pad):
    """(B, Cin, H, W) -> (Cin*9, 4*q_pad) quadrant-concatenated im2col.

    Column j of quadrant block k = (hp, wp) holds the 3x3 patch (over Cin)
    centred at conv-output pixel (2*ho + hp, 2*wo + wp) for j = (b, ho, wo);
    each quadrant block is zero-padded from Q = B*Ho*Wo to q_pad columns.
    Pure layout plumbing: 9 static slices + one transpose, fused by XLA.
    """
    B, Cin, H, W = x.shape
    Ho, Wo = H // 2, W // 2
    Q = B * Ho * Wo
    xp = jnp.pad(x, ((0, 0), (0, 0), (1, 1), (1, 1)))
    taps = jnp.stack([xp[:, :, dy:dy + H, dx:dx + W]
                      for dy in range(3) for dx in range(3)], axis=2)   # (B,Cin,9,H,W)
    t = taps.reshape(B, Cin, 9, Ho, 2, Wo, 2)
    t = t.transpose(4, 6, 1, 2, 0, 3, 5).reshape(4, Cin * 9, Q)         # (quad, K, Q)
    t = jnp.pad(t, ((0, 0), (0, 0), (0, q_pad - Q)))                    # (quad, K, Qp)
    return t.transpose(1, 0, 2).reshape(Cin * 9, 4 * q_pad)             # (K, 4*Qp)


def conv_block_forward(x, w, gamma, beta):
    """x: (B, Cin, H, W) f32  ->  (B, Cout, H//2, W//2) f32."""
    B, Cin, H, W = x.shape
    Cout = w.shape[0]
    Ho, Wo = H // 2, W // 2
    Q = B * Ho * Wo
    q_pad = ((Q + 127) // 128) * 128
    K = Cin * 9

    xq = _im2col_pool_quadrants(x, q_pad)                       # glue: layout
    w2d = w.reshape(Cout, K)                                    # glue: weight layout
    col = lambda v: v.reshape(Cout, 1).astype(jnp.float32)      # glue: (Cout,1) cols

    # TODO(synk): if B or hdim grows, split Cout/B over a real "parallel" grid
    #             axis (v7x has 2 TCs) and fuse the im2col taps into the kernel.
    kernel = partial(_conv_block_kernel, n_px=B * H * W, q_pad=q_pad)
    out = pl.pallas_call(
        kernel,
        out_shape=jax.ShapeDtypeStruct((Cout, q_pad), jnp.float32),
        grid=(1,),
        in_specs=[
            pl.BlockSpec((K, 4 * q_pad), lambda i: (0, 0)),
            pl.BlockSpec((Cout, K), lambda i: (0, 0)),
            pl.BlockSpec((Cout, 1), lambda i: (0, 0)),
            pl.BlockSpec((Cout, 1), lambda i: (0, 0)),
        ],
        out_specs=pl.BlockSpec((Cout, q_pad), lambda i: (0, 0)),
        compiler_params=pltpu.CompilerParams(dimension_semantics=("arbitrary",)),
    )(xq, w2d, col(gamma), col(beta))
    # (Cout, Qp) -> (B, Cout, Ho, Wo)                            glue: layout
    return out[:, :Q].reshape(Cout, B, Ho, Wo).transpose(1, 0, 2, 3)


# -----------------------------------------------------------------------------
# affine_grid + grid_sample (bilinear, align_corners=True, zeros padding).
# Separable bilinear: column weights Bw:(W,P) contracted on the MXU per channel,
# row weights A:(H,P) contracted with a cheap multiply + sublane reduce.
# -----------------------------------------------------------------------------
def _grid_sample_kernel(theta_ref, x_ref, o_ref, *, C, H, W):
    b = pl.program_id(0)
    t0 = theta_ref[b, 0]; t1 = theta_ref[b, 1]; t2 = theta_ref[b, 2]
    t3 = theta_ref[b, 3]; t4 = theta_ref[b, 4]; t5 = theta_ref[b, 5]

    P = H * W
    # Output pixel coordinates as lane-parallel (1, P) rows (integer iota math).
    pcol = lax.broadcasted_iota(jnp.int32, (1, P), 1)
    iy_o = pcol // W
    ix_o = pcol - iy_o * W

    # affine_grid, align_corners=True.
    xs = -1.0 + 2.0 * ix_o.astype(jnp.float32) / float(W - 1)
    ys = -1.0 + 2.0 * iy_o.astype(jnp.float32) / float(H - 1)
    gx = t0 * xs + t1 * ys + t2
    gy = t3 * xs + t4 * ys + t5

    # grid_sample, align_corners=True -> continuous source coordinates.
    ix = (gx + 1.0) * 0.5 * float(W - 1)
    iy = (gy + 1.0) * 0.5 * float(H - 1)
    x0f = jnp.floor(ix); y0f = jnp.floor(iy)
    x0 = x0f.astype(jnp.int32); y0 = y0f.astype(jnp.int32)
    wx1 = ix - x0f; wx0 = 1.0 - wx1
    wy1 = iy - y0f; wy0 = 1.0 - wy1

    # Separable bilinear weight matrices.  Out-of-bounds corner indices never
    # match the in-range iota, so they get weight 0 == zeros padding (no mask).
    xi = lax.broadcasted_iota(jnp.int32, (W, P), 0)
    Bw = jnp.where(xi == x0, wx0, 0.0) + jnp.where(xi == x0 + 1, wx1, 0.0)   # (W, P)
    yi = lax.broadcasted_iota(jnp.int32, (H, P), 0)
    A = jnp.where(yi == y0, wy0, 0.0) + jnp.where(yi == y0 + 1, wy1, 0.0)    # (H, P)

    # out[c, p] = sum_y A[y, p] * sum_x img[c, y, x] * Bw[x, p]
    rows = []
    for c in range(C):                                  # static unroll, C is tiny
        n_c = jnp.dot(x_ref[0, c], Bw, preferred_element_type=jnp.float32)   # (H, P)
        rows.append(jnp.sum(A * n_c, axis=0, keepdims=True))                 # (1, P)
    o_ref[0] = jnp.concatenate(rows, axis=0)            # (C, P)


def grid_sample_affine(x_nchw, theta6):
    """F.affine_grid + F.grid_sample (bilinear, zeros, align_corners=True)."""
    B, C, H, W = x_nchw.shape
    P = H * W
    kernel = partial(_grid_sample_kernel, C=C, H=H, W=W)
    # TODO(synk): for much larger images add a second grid dim over the output
    #             pixel axis (multiples of 128) so stores stay lane-dense and the
    #             (H,P)/(W,P) weight slabs stay small.
    out_flat = pl.pallas_call(
        kernel,
        out_shape=jax.ShapeDtypeStruct((B, C, P), jnp.float32),
        grid=(B,),
        in_specs=[
            pl.BlockSpec(memory_space=pltpu.MemorySpace.SMEM),    # theta (B, 6)
            pl.BlockSpec((1, C, H, W), lambda b: (b, 0, 0, 0)),
        ],
        out_specs=pl.BlockSpec((1, C, P), lambda b: (b, 0, 0)),
        compiler_params=pltpu.CompilerParams(
            dimension_semantics=("parallel",),
            vmem_limit_bytes=32 * 1024 * 1024),
    )(theta6, x_nchw)
    return out_flat.reshape(B, C, H, W)                   # glue


# -----------------------------------------------------------------------------
# Parameter init (deterministic, synthetic) and full forward pass
# -----------------------------------------------------------------------------
def init_params(key, cin, hdim, fcx):
    ks = jax.random.split(key, 6)

    def u(k, shape, fan_in):
        lim = 1.0 / math.sqrt(fan_in)
        return jax.random.uniform(k, shape, jnp.float32, -lim, lim)

    F = hdim * fcx * fcx
    # Conv biases are omitted: train-mode BatchNorm cancels them exactly.
    return dict(
        w1=u(ks[0], (hdim, cin, 3, 3), cin * 9),
        g1=jnp.ones((hdim,), jnp.float32), bt1=jnp.zeros((hdim,), jnp.float32),
        w2=u(ks[1], (hdim, hdim, 3, 3), hdim * 9),
        g2=jnp.ones((hdim,), jnp.float32), bt2=jnp.zeros((hdim,), jnp.float32),
        fc_w=u(ks[2], (F, 16), F), fc_b=u(ks[3], (1, 16), F),
        hd_w=u(ks[4], (16, 4), 16), hd_b=u(ks[5], (1, 4), 16),
    )


def stnv1_forward(x, p, key, args):
    """Training-mode forward (support=False). x: (B, C, H, W) f32."""
    B, C, H, W = x.shape

    # feature extractor: two fused conv blocks (Pallas)
    c1 = conv_block_forward(x, p['w1'], p['g1'], p['bt1'])     # (B, h, H/2, W/2)
    c2 = conv_block_forward(c1, p['w2'], p['g2'], p['bt2'])    # (B, h, H/4, W/4)
    flat = c2.reshape(B, -1)                                   # NCHW flatten

    # FC + heads: tiny (B x 392)/(B x 16) matmuls -> plain JAX (a dedicated
    # pallas_call here is pure launch/DMA/masked-store overhead).
    h = jnp.maximum(flat @ p['fc_w'] + p['fc_b'], 0.0)         # (B, 16)
    z = h @ p['hd_w'] + p['hd_b']                              # (B, 4)
    theta_ang = jnp.tanh(z[:, 0]) * args['theta']
    tx = jnp.tanh(z[:, 1]) * args['t']
    ty = jnp.tanh(z[:, 2]) * args['t']
    scale = jnp.tanh(z[:, 3]) * args['scalediff'] + 1.0

    # random horizontal flip + per-sample identity override (tiny B-sized math)
    k1, k2 = jax.random.split(key)
    flip = 1.0 - 2.0 * (jax.random.uniform(k1, (B,)) <= args['fliphoriz']).astype(jnp.float32)
    Theta = jnp.stack([scale * flip * jnp.cos(theta_ang),
                       -scale * jnp.sin(theta_ang),
                       tx,
                       scale * flip * jnp.sin(theta_ang),
                       scale * jnp.cos(theta_ang),
                       ty], axis=1)
    U = jax.random.uniform(k2, (B,))
    ident = jnp.array([1., 0., 0., 0., 1., 0.], jnp.float32)
    Theta = jnp.where((U <= args['dropout'])[:, None], ident[None, :], Theta)

    results = grid_sample_affine(x, Theta)
    return results, Theta.reshape(B, 2, 3), {}


if __name__ == "__main__":
    args = dict(stn_hid_dim=8, dropout=0.5, scalediff=0.1,
                theta=math.pi / 4, t=0.1, fliphoriz=0.3)
    B, C, H, W = 2, 3, 28, 28            # xdim = (3, 28, 28) -> fcx = 7, two conv blocks
    key = jax.random.PRNGKey(0)
    kx, kp, kr = jax.random.split(key, 3)

    x = jax.random.normal(kx, (B, C, H, W), jnp.float32)
    params = init_params(kp, C, args['stn_hid_dim'], H // 4)

    results, transform, extra = stnv1_forward(x, params, kr, args)
    jax.block_until_ready((results, transform))
    assert results.shape == (B, C, H, W) and transform.shape == (B, 2, 3)
    print("KERNEL_OK")
</pallas_src>

<mosaic_0001>
module attributes {stable_mosaic.version = 11 : i64} {
  func.func @_conv_block_kernel(%arg0: i32, %arg1: memref<27x2048xf32, #tpu.memory_space<vmem>>, %arg2: memref<8x27xf32, #tpu.memory_space<vmem>>, %arg3: memref<8x1xf32, #tpu.memory_space<vmem>>, %arg4: memref<8x1xf32, #tpu.memory_space<vmem>>, %arg5: memref<8x512xf32, #tpu.memory_space<vmem>>) attributes {dimension_semantics = [#tpu.dimension_semantics<arbitrary>], iteration_bounds = array<i64: 1>, scalar_prefetch = 0 : i64, scratch_operands = 0 : i64, tpu.core_type = #tpu.core_type<tc>, window_params = [{pipeline_mode = #tpu.pipeline_mode<synchronous>, transform_indices = @transform_0, window_bounds = array<i64: 27, 2048>}, {pipeline_mode = #tpu.pipeline_mode<synchronous>, transform_indices = @transform_1, window_bounds = array<i64: 8, 27>}, {pipeline_mode = #tpu.pipeline_mode<synchronous>, transform_indices = @transform_2, window_bounds = array<i64: 8, 1>}, {pipeline_mode = #tpu.pipeline_mode<synchronous>, transform_indices = @transform_3, window_bounds = array<i64: 8, 1>}, {pipeline_mode = #tpu.pipeline_mode<synchronous>, transform_indices = @transform_4, window_bounds = array<i64: 8, 512>}]} {
    %c0 = arith.constant 0 : index
    %c0_0 = arith.constant 0 : index
    %0 = vector.load %arg2[%c0, %c0_0] : memref<8x27xf32, #tpu.memory_space<vmem>>, vector<8x27xf32>
    %c0_1 = arith.constant 0 : index
    %c0_2 = arith.constant 0 : index
    %1 = vector.load %arg1[%c0_1, %c0_2] : memref<27x2048xf32, #tpu.memory_space<vmem>>, vector<27x2048xf32>
    %cst = arith.constant dense<0.000000e+00> : vector<8x2048xf32>
    %2 = tpu.matmul %0, %1, %cst {dimension_numbers = #tpu.dot_dimension_numbers<[1], [0], [0], [1], [0, 0, 1, 1], [], []>} : vector<8x27xf32>, vector<27x2048xf32>, vector<8x2048xf32> -> vector<8x2048xf32>
    %cst_3 = arith.constant dense<0.000000e+00> : vector<8xf32>
    %3 = vector.multi_reduction <add>, %2, %cst_3 [1] : vector<8x2048xf32> to vector<8xf32>
    %4 = vector.shape_cast %3 : vector<8xf32> to vector<8x1xf32>
    %cst_4 = arith.constant 6.37755089E-4 : f32
    %5 = vector.broadcast %cst_4 : f32 to vector<8x1xf32>
    %6 = arith.mulf %4, %5 : vector<8x1xf32>
    %7 = arith.mulf %2, %2 : vector<8x2048xf32>
    %cst_5 = arith.constant dense<0.000000e+00> : vector<8xf32>
    %8 = vector.multi_reduction <add>, %7, %cst_5 [1] : vector<8x2048xf32> to vector<8xf32>
    %9 = vector.shape_cast %8 : vector<8xf32> to vector<8x1xf32>
    %cst_6 = arith.constant 6.37755089E-4 : f32
    %10 = vector.broadcast %cst_6 : f32 to vector<8x1xf32>
    %11 = arith.mulf %9, %10 : vector<8x1xf32>
    %12 = arith.mulf %6, %6 : vector<8x1xf32>
    %13 = arith.subf %11, %12 : vector<8x1xf32>
    %c0_7 = arith.constant 0 : index
    %c0_8 = arith.constant 0 : index
    %14 = vector.load %arg3[%c0_7, %c0_8] : memref<8x1xf32, #tpu.memory_space<vmem>>, vector<8x1xf32>
    %cst_9 = arith.constant 9.99999974E-6 : f32
    %15 = vector.broadcast %cst_9 : f32 to vector<8x1xf32>
    %16 = arith.addf %13, %15 : vector<8x1xf32>
    %17 = math.rsqrt %16 : vector<8x1xf32>
    %18 = arith.mulf %14, %17 : vector<8x1xf32>
    %c0_10 = arith.constant 0 : index
    %c0_11 = arith.constant 0 : index
    %19 = vector.load %arg4[%c0_10, %c0_11] : memref<8x1xf32, #tpu.memory_space<vmem>>, vector<8x1xf32>
    %20 = arith.mulf %6, %18 : vector<8x1xf32>
    %21 = arith.subf %19, %20 : vector<8x1xf32>
    %22 = vector.broadcast %18 : vector<8x1xf32> to vector<8x2048xf32>
    %23 = arith.mulf %2, %22 : vector<8x2048xf32>
    %24 = vector.broadcast %21 : vector<8x1xf32> to vector<8x2048xf32>
    %25 = arith.addf %23, %24 : vector<8x2048xf32>
    %cst_12 = arith.constant 0.000000e+00 : f32
    %26 = vector.broadcast %cst_12 : f32 to vector<8x2048xf32>
    %27 = arith.maximumf %25, %26 : vector<8x2048xf32>
    %28 = vector.extract_strided_slice %27 {offsets = [0, 0], sizes = [8, 512], strides = [1, 1]} : vector<8x2048xf32> to vector<8x512xf32>
    %29 = vector.extract_strided_slice %27 {offsets = [0, 512], sizes = [8, 512], strides = [1, 1]} : vector<8x2048xf32> to vector<8x512xf32>
    %30 = vector.extract_strided_slice %27 {offsets = [0, 1024], sizes = [8, 512], strides = [1, 1]} : vector<8x2048xf32> to vector<8x512xf32>
    %31 = vector.extract_strided_slice %27 {offsets = [0, 1536], sizes = [8, 512], strides = [1, 1]} : vector<8x2048xf32> to vector<8x512xf32>
    %32 = arith.maximumf %28, %29 : vector<8x512xf32>
    %33 = arith.maximumf %30, %31 : vector<8x512xf32>
    %34 = arith.maximumf %32, %33 : vector<8x512xf32>
    %c0_13 = arith.constant 0 : index
    %c0_14 = arith.constant 0 : index
    %35 = vector.load %arg5[%c0_13, %c0_14] : memref<8x512xf32, #tpu.memory_space<vmem>>, vector<8x512xf32>
    tpu.vector_store %arg5[%c0_13, %c0_14], %34 {strides = array<i32>} : memref<8x512xf32, #tpu.memory_space<vmem>>, vector<8x512xf32>,
    return
  }
  func.func @transform_0(%arg0: i32) -> (i32, i32) {
    %c0_i32 = arith.constant 0 : i32
    %c0_i32_0 = arith.constant 0 : i32
    %c0_i32_1 = arith.constant 0 : i32
    return %c0_i32, %c0_i32_0 : i32, i32
  }
  func.func @transform_1(%arg0: i32) -> (i32, i32) {
    %c0_i32 = arith.constant 0 : i32
    %c0_i32_0 = arith.constant 0 : i32
    %c0_i32_1 = arith.constant 0 : i32
    return %c0_i32, %c0_i32_0 : i32, i32
  }
  func.func @transform_2(%arg0: i32) -> (i32, i32) {
    %c0_i32 = arith.constant 0 : i32
    %c0_i32_0 = arith.constant 0 : i32
    %c0_i32_1 = arith.constant 0 : i32
    return %c0_i32, %c0_i32_0 : i32, i32
  }
  func.func @transform_3(%arg0: i32) -> (i32, i32) {
    %c0_i32 = arith.constant 0 : i32
    %c0_i32_0 = arith.constant 0 : i32
    %c0_i32_1 = arith.constant 0 : i32
    return %c0_i32, %c0_i32_0 : i32, i32
  }
  func.func @transform_4(%arg0: i32) -> (i32, i32) {
    %c0_i32 = arith.constant 0 : i32
    %c0_i32_0 = arith.constant 0 : i32
    %c0_i32_1 = arith.constant 0 : i32
    return %c0_i32, %c0_i32_0 : i32, i32
  }
}

</mosaic_0001>

<bundles_post_ra>
// kernel: tpu_custom_call.1
= control target key start
LH: loop header
LB: loop body
LE: loop exit
PB: predicated region body
PF: predicated region fallthrough
CT: control target
= control target key end

     0   :  { %9 = vsyncpa [#allocation3], 0  ;;  %s1082_s0 = inlined_call_operand.hbm [shape: f32[27,2048], index: 0, kind: input, shape index: {}]   ;;  %s1083_s1 = inlined_call_operand.vmem [shape: f32[8,27], index: 1, kind: input, shape index: {}]   ;;  %s1084_s2 = inlined_call_operand.vmem [shape: f32[8,1], index: 2, kind: input, shape index: {}]   ;;  %s1085_s3 = inlined_call_operand.vmem [shape: f32[8,1], index: 3, kind: input, shape index: {}]   ;;  %s1086_s4 = inlined_call_operand.hbm [shape: f32[8,512], index: 4, kind: output, shape index: {}]  }
   0x1   :  { %10 = vsyncpa [#allocation4], 0  ;;  %s946_s15 = smov [#allocation2]  }
   0x2   :  { %s16_s16 = sshll.u32 %s946_s15, 4  ;;  %s17_s16 = int_to_ptr.vmem [resolvable:$true] %s16_s16 }
   0x3   :  { %s910_s17 = scalar_lea.vmem %s17_s16, 8192  ;;  %p915_p1 = scmp.lt.s32.totalorder %s17_s16, %s17_s16 }
   0x4   :  { %p911_p0 = scmp.ne.s32.totalorder %s17_s16, %s910_s17  ;;  %p916_p2 = scmp.lt.s32.totalorder %s910_s17, %s910_s17 }
   0x6   :  { %p917_p3 = por %p916_p2, %p915_p1 }
   0x8   :  { %p918_p4 = pnand %p917_p3, %p911_p0 }
   0xa   :  { %921 = shalt.err (!%p918_p4)
}
   0xb   :  { %s947_s18 = smov 2048   ;;  %s948_s19 = smov 128  }
   0xc   :  { %22 = dma.hbm_to_vmem [thread:$0]  %s1082_s0, 8192, %s17_s16, [#allocation3], %s947_s18, %s947_s18, %s948_s19  }
   0xd   :  { %942 = dma.done.wait [#allocation3], 8192  }
   0xe   :  { %943 = vsyncadd [#allocation3], 4294959104  ;;  %v949_v0 = vmov 0.0   ;;  %vm101_vm0 = vcmask 1042432   ;;  %v82_v1 = vld [vmem:[#allocation2 + $0x188] sm:$0x7] }
   0xf   :  { %214 = vmatprep.mubr.f32.mxu0 %v949_v0  ;;  %285 = vmatprep.mubr.f32.mxu1 %v949_v0  ;;  %v81_v2 = vld [vmem:[#allocation2 + $0x180] sm:$0x7]  ;;  %v66_v3 = vld [vmem:[#allocation2 + $0x108] sm:$0xff]  ;;  %v84_v4 = vld [vmem:[#allocation2 + $0x198] sm:$0x7]  ;;  %vm97_vm1 = vcmask 220160  }
  0x10   :  { %868 = vmatprep.subr.msk.mxu0 %vm101_vm0, %v82_v1  ;;  %v65_v5 = vld [vmem:[#allocation2 + $0x100] sm:$0xff]  ;;  %v83_v6 = vld [vmem:[#allocation2 + $0x190] sm:$0x7]  ;;  %871 = vmatprep.subr.msk.mxu1 %vm101_vm0, %v84_v4  ;;  %v50_v7 = vld [vmem:[#allocation2 + $0x88] sm:$0xff] }
  0x11   :  { %869 = vmatpush1.msk.msra.mxu0 %vm101_vm0, %v81_v2  ;;  %v68_v8 = vld [vmem:[#allocation2 + $0x118] sm:$0xff]  ;;  %872 = vmatpush1.msk.msra.mxu1 %vm101_vm0, %v83_v6  ;;  %v49_v9 = vld [vmem:[#allocation2 + $0x80] sm:$0xff]  ;;  %v67_v10 = vld [vmem:[#allocation2 + $0x110] sm:$0xff] }
  0x12   :  { %176 = vmatprep.subr.mxu0 %v66_v3  ;;  %v52_v11 = vld [vmem:[#allocation2 + $0x98] sm:$0xff]  ;;  %247 = vmatprep.subr.mxu1 %v68_v8  ;;  %v34_v12 = vld [vmem:[#allocation2 + $0x8] sm:$0xff]  ;;  %v51_v13 = vld [vmem:[#allocation2 + $0x90] sm:$0xff] }
  0x13   :  { %177 = vmatpush1.msra.mxu0 %v65_v5  ;;  %248 = vmatpush1.msra.mxu1 %v67_v10  ;;  %v33_v14 = vld [vmem:[#allocation2] sm:$0xff]  ;;  %v36_v15 = vld [vmem:[#allocation2 + $0x18] sm:$0xff]  ;;  %v86_v17 = vld [vmem:[#allocation2 + $0x1a8] sm:$0x7] }
  0x14   :  { %178 = vmatprep.subr.mxu0 %v50_v7  ;;  %249 = vmatprep.subr.mxu1 %v52_v11  ;;  %v989_v16 = vld [vmem:[%s1083_s1] sm:$0xff]  ;;  %v35_v18 = vld [vmem:[#allocation2 + $0x10] sm:$0xff]  ;;  %v70_v20 = vld [vmem:[#allocation2 + $0x128] sm:$0xff] }
  0x15   :  { %179 = vmatpush1.msra.mxu0 %v49_v9  ;;  %250 = vmatpush1.msra.mxu1 %v51_v13  ;;  %v85_v19 = vld [vmem:[#allocation2 + $0x1a0] sm:$0x7]  ;;  %v88_v21 = vld [vmem:[#allocation2 + $0x1b8] sm:$0x7]  ;;  %v87_v23 = vld [vmem:[#allocation2 + $0x1b0] sm:$0x7] }
  0x16   :  { %180 = vmatprep.subr.mxu0 %v34_v12  ;;  %251 = vmatprep.subr.mxu1 %v36_v15  ;;  %v69_v22 = vld [vmem:[#allocation2 + $0x120] sm:$0xff]  ;;  %v54_v24 = vld [vmem:[#allocation2 + $0xa8] sm:$0xff]  ;;  %v72_v25 = vld [vmem:[#allocation2 + $0x138] sm:$0xff] }
  0x17   :  { %181 = vmatpush1.msra.mxu0 %v33_v14  ;;  %252 = vmatpush1.msra.mxu1 %v35_v18  ;;  %v53_v26 = vld [vmem:[#allocation2 + $0xa0] sm:$0xff]  ;;  %v71_v27 = vld [vmem:[#allocation2 + $0x130] sm:$0xff]  ;;  %v38_v28 = vld [vmem:[#allocation2 + $0x28] sm:$0xff] }
  0x18   :  { %870 = vmatmul.mubr.msk.f32.vlgmr.msra.gmra.mxu0 %vm97_vm1, %v989_v16  ;;  %874 = vmatprep.subr.msk.mxu0 %vm101_vm0, %v86_v17  ;;  %v56_v29 = vld [vmem:[#allocation2 + $0xb8] sm:$0xff]  ;;  %v37_v30 = vld [vmem:[#allocation2 + $0x20] sm:$0xff]  ;;  %v55_v31 = vld [vmem:[#allocation2 + $0xb0] sm:$0xff] }
  0x19   :  { %875 = vmatpush1.msk.msra.mxu0 %vm101_vm0, %v85_v19  ;;  %873 = vmatmul.mubr.msk.f32.vlgmr.msra.gmra.mxu1 %vm97_vm1, %v989_v16  ;;  %v40_v32 = vld [vmem:[#allocation2 + $0x38] sm:$0xff]  ;;  %v90_v33 = vld [vmem:[#allocation2 + $0x1c8] sm:$0x7]  ;;  %v39_v34 = vld [vmem:[#allocation2 + $0x30] sm:$0xff] }
  0x1a   :  { %318 = vmatprep.subr.mxu0 %v70_v20  ;;  %877 = vmatprep.subr.msk.mxu1 %vm101_vm0, %v88_v21  ;;  %v89_v35 = vld [vmem:[#allocation2 + $0x1c0] sm:$0x7]  ;;  %v74_v36 = vld [vmem:[#allocation2 + $0x148] sm:$0xff]  ;;  %v92_v37 = vld [vmem:[#allocation2 + $0x1d8] sm:$0x7] }
  0x1b   :  { %319 = vmatpush1.msra.mxu0 %v69_v22  ;;  %878 = vmatpush1.msk.msra.mxu1 %vm101_vm0, %v87_v23  ;;  %v73_v38 = vld [vmem:[#allocation2 + $0x140] sm:$0xff]  ;;  %v91_v39 = vld [vmem:[#allocation2 + $0x1d0] sm:$0x7]  ;;  %v58_v40 = vld [vmem:[#allocation2 + $0xc8] sm:$0xff] }
  0x1c   :  { %320 = vmatprep.subr.mxu0 %v54_v24  ;;  %389 = vmatprep.subr.mxu1 %v72_v25  ;;  %v76_v41 = vld [vmem:[#allocation2 + $0x158] sm:$0xff]  ;;  %v57_v42 = vld [vmem:[#allocation2 + $0xc0] sm:$0xff]  ;;  %v75_v43 = vld [vmem:[#allocation2 + $0x150] sm:$0xff] }
  0x1d   :  { %321 = vmatpush1.msra.mxu0 %v53_v26  ;;  %390 = vmatpush1.msra.mxu1 %v71_v27  ;;  %v42_v44 = vld [vmem:[#allocation2 + $0x48] sm:$0xff]  ;;  %v60_v45 = vld [vmem:[#allocation2 + $0xd8] sm:$0xff]  ;;  %v41_v46 = vld [vmem:[#allocation2 + $0x40] sm:$0xff] }
  0x1e   :  { %322 = vmatprep.subr.mxu0 %v38_v28  ;;  %391 = vmatprep.subr.mxu1 %v56_v29  ;;  %v59_v47 = vld [vmem:[#allocation2 + $0xd0] sm:$0xff]  ;;  %v44_v48 = vld [vmem:[#allocation2 + $0x58] sm:$0xff]  ;;  %v94_v49 = vld [vmem:[#allocation2 + $0x1e8] sm:$0x7] }
  0x1f   :  { %323 = vmatpush1.msra.mxu0 %v37_v30  ;;  %356 = vmatprep.mubr.f32.mxu0 %v949_v0  ;;  %v43_v50 = vld [vmem:[#allocation2 + $0x50] sm:$0xff]  ;;  %v93_v51 = vld [vmem:[#allocation2 + $0x1e0] sm:$0x7]  ;;  %v78_v52 = vld [vmem:[#allocation2 + $0x168] sm:$0xff] }
  0x20   :  { %392 = vmatpush1.msra.mxu1 %v55_v31  ;;  %876 = vmatmul.mubr.msk.f32.vlgmr.msra.gmra.mxu0 %vm97_vm1, %v989_v16  ;;  %v96_v53 = vld [vmem:[#allocation2 + $0x1f8] sm:$0x7]  ;;  %v77_v54 = vld [vmem:[#allocation2 + $0x160] sm:$0xff]  ;;  %v95_v55 = vld [vmem:[#allocation2 + $0x1f0] sm:$0x7] }
  0x21   :  { %393 = vmatprep.subr.mxu1 %v40_v32  ;;  %880 = vmatprep.subr.msk.mxu0 %vm101_vm0, %v90_v33  ;;  %v62_v56 = vld [vmem:[#allocation2 + $0xe8] sm:$0xff]  ;;  %v80_v57 = vld [vmem:[#allocation2 + $0x178] sm:$0xff]  ;;  %v61_v58 = vld [vmem:[#allocation2 + $0xe0] sm:$0xff] }
  0x22   :  { %394 = vmatpush1.msra.mxu1 %v39_v34  ;;  %427 = vmatprep.mubr.f32.mxu1 %v949_v0  ;;  %v79_v59 = vld [vmem:[#allocation2 + $0x170] sm:$0xff]  ;;  %v46_v60 = vld [vmem:[#allocation2 + $0x68] sm:$0xff]  ;;  %v64_v61 = vld [vmem:[#allocation2 + $0xf8] sm:$0xff] }
  0x23   :  { %881 = vmatpush1.msk.msra.mxu0 %vm101_vm0, %v89_v35  ;;  %879 = vmatmul.mubr.msk.f32.vlgmr.msra.gmra.mxu1 %vm97_vm1, %v989_v16  ;;  %v45_v62 = vld [vmem:[#allocation2 + $0x60] sm:$0xff]  ;;  %v63_v63 = vld [vmem:[#allocation2 + $0xf0] sm:$0xff]  ;;  %v48_v1 = vld [vmem:[#allocation2 + $0x78] sm:$0xff] }
  0x24   :  { %460 = vmatprep.subr.mxu0 %v74_v36  ;;  %883 = vmatprep.subr.msk.mxu1 %vm101_vm0, %v92_v37  ;;  %v47_v2 = vld [vmem:[#allocation2 + $0x70] sm:$0xff] }
  0x25   :  { %461 = vmatpush1.msra.mxu0 %v73_v38  ;;  %884 = vmatpush1.msk.msra.mxu1 %vm101_vm0, %v91_v39 }
  0x26   :  { %462 = vmatprep.subr.mxu0 %v58_v40  ;;  %531 = vmatprep.subr.mxu1 %v76_v41 }
  0x27   :  { %463 = vmatpush1.msra.mxu0 %v57_v42  ;;  %532 = vmatpush1.msra.mxu1 %v75_v43 }
  0x28   :  { %464 = vmatprep.subr.mxu0 %v42_v44  ;;  %533 = vmatprep.subr.mxu1 %v60_v45 }
  0x29   :  { %465 = vmatpush1.msra.mxu0 %v41_v46  ;;  %498 = vmatprep.mubr.f32.mxu0 %v949_v0 }
  0x2a   :  { %534 = vmatpush1.msra.mxu1 %v59_v47  ;;  %882 = vmatmul.mubr.msk.f32.vlgmr.msra.gmra.mxu0 %vm97_vm1, %v989_v16 }
  0x2b   :  { %535 = vmatprep.subr.mxu1 %v44_v48  ;;  %886 = vmatprep.subr.msk.mxu0 %vm101_vm0, %v94_v49 }
  0x2c   :  { %536 = vmatpush1.msra.mxu1 %v43_v50  ;;  %569 = vmatprep.mubr.f32.mxu1 %v949_v0 }
  0x2d   :  { %887 = vmatpush1.msk.msra.mxu0 %vm101_vm0, %v93_v51  ;;  %885 = vmatmul.mubr.msk.f32.vlgmr.msra.gmra.mxu1 %vm97_vm1, %v989_v16 }
  0x2e   :  { %602 = vmatprep.subr.mxu0 %v78_v52  ;;  %889 = vmatprep.subr.msk.mxu1 %vm101_vm0, %v96_v53 }
  0x2f   :  { %603 = vmatpush1.msra.mxu0 %v77_v54  ;;  %890 = vmatpush1.msk.msra.mxu1 %vm101_vm0, %v95_v55 }
  0x30   :  { %604 = vmatprep.subr.mxu0 %v62_v56  ;;  %673 = vmatprep.subr.mxu1 %v80_v57 }
  0x31   :  { %605 = vmatpush1.msra.mxu0 %v61_v58  ;;  %674 = vmatpush1.msra.mxu1 %v79_v59 }
  0x32   :  { %606 = vmatprep.subr.mxu0 %v46_v60  ;;  %675 = vmatprep.subr.mxu1 %v64_v61 }
  0x33   :  { %607 = vmatpush1.msra.mxu0 %v45_v62  ;;  %640 = vmatprep.mubr.f32.mxu0 %v949_v0 }
  0x34   :  { %676 = vmatpush1.msra.mxu1 %v63_v63  ;;  %888 = vmatmul.mubr.msk.f32.vlgmr.msra.gmra.mxu0 %vm97_vm1, %v989_v16 }
  0x35   :  { %677 = vmatprep.subr.mxu1 %v48_v1  ;;  %711 = vmatprep.mubr.f32.mxu1 %v949_v0  ;;  %v950_v1 = vmov 0  }
  0x36   :  { %678 = vmatpush1.msra.mxu1 %v47_v2  ;;  %898 = vset.pattern.permute.xlu1 %v950_v1 }
  0x37   :  { %891 = vmatmul.mubr.msk.f32.vlgmr.msra.gmra.mxu1 %vm97_vm1, %v989_v16  ;;  %899 = vset.pattern.permute.xlu0 %v950_v1 }
  0xd8   :  { %v1025_v3 = vpop.f32.mrf.mxu0 }
  0xd9   :  { %v1029_v5 = vpop.f32.mrf.mxu1  ;;  %v736_v6 = vmul.f32 %v1025_v3, %v1025_v3 }
  0xda   :  { %v1027_v4 = vpop.f32.mrf.mxu0  ;;  %v738_v0 = vmul.f32 %v1029_v5, %v1029_v5 }
  0xdb   :  { %v718_v7 = vadd.f32 %v1027_v4, %v1025_v3  ;;  %v737_v8 = vmul.f32 %v1027_v4, %v1027_v4  ;;  %v1039_v9 = vpop.f32.mrf.mxu1 }
  0xdc   :  { %v739_v14 = vmul.f32 %v1039_v9, %v1039_v9 }
  0xdd   :  { %v752_v10 = vadd.f32 %v737_v8, %v736_v6  ;;  %v719_v11 = vadd.f32 %v718_v7, %v1029_v5 }
  0xdf   :  { %v753_v12 = vadd.f32 %v752_v10, %v738_v0  ;;  %v720_v13 = vadd.f32 %v719_v11, %v1039_v9 }
  0xe0   :  { %v1045_v16 = vpop.f32.mrf.mxu0 }
  0xe1   :  { %v754_v15 = vadd.f32 %v753_v12, %v739_v14  ;;  %v721_v17 = vadd.f32 %v720_v13, %v1045_v16  ;;  %v740_v18 = vmul.f32 %v1045_v16, %v1045_v16  ;;  %v772_v12 = vld [vmem:[%s1084_s2] sm:$0xff]  ;;  %s951_s2 = smov [#allocation5]  }
  0xe2   :  { %v1050_v19 = vpop.f32.mrf.mxu0 }
  0xe3   :  { %v755_v20 = vadd.f32 %v754_v15, %v740_v18  ;;  %v722_v21 = vadd.f32 %v721_v17, %v1050_v19  ;;  %v741_v22 = vmul.f32 %v1050_v19, %v1050_v19  ;;  %v1055_v23 = vpop.f32.mrf.mxu1  ;;  %v776_v15 = vld [vmem:[%s1085_s3] sm:$0xff]  ;;  %s859_s3 = sshll.u32 %s951_s2, 4  ;;  %s860_s3 = int_to_ptr.vmem [resolvable:$true] %s859_s3 }
  0xe4   :  { %v742_v24 = vmul.f32 %v1055_v23, %v1055_v23  ;;  %s922_s26 = scalar_lea.vmem %s860_s3, 512  ;;  %p927_p6 = scmp.lt.s32.totalorder %s860_s3, %s860_s3 }
  0xe5   :  { %v756_v25 = vadd.f32 %v755_v20, %v741_v22  ;;  %v723_v26 = vadd.f32 %v722_v21, %v1055_v23  ;;  %v1060_v27 = vpop.f32.mrf.mxu1  ;;  %p923_p5 = scmp.ne.s32.totalorder %s860_s3, %s922_s26  ;;  %p928_p7 = scmp.lt.s32.totalorder %s922_s26, %s922_s26 }
  0xe6   :  { %v743_v30 = vmul.f32 %v1060_v27, %v1060_v27 }
  0xe7   :  { %v757_v28 = vadd.f32 %v756_v25, %v742_v24  ;;  %v724_v29 = vadd.f32 %v723_v26, %v1060_v27  ;;  %p929_p8 = por %p928_p7, %p927_p6 }
  0xe9   :  { %v758_v31 = vadd.f32 %v757_v28, %v743_v30  ;;  %p930_p9 = pnand %p929_p8, %p923_p5 }
  0xea   :  { %v500_v32 = vpop.f32.mrf.mxu0 }
  0xeb   :  { %v725_v33 = vadd.f32 %v724_v29, %v500_v32  ;;  %v744_v34 = vmul.f32 %v500_v32, %v500_v32 }
  0xec   :  { %v502_v35 = vpop.f32.mrf.mxu0 }
  0xed   :  { %v759_v36 = vadd.f32 %v758_v31, %v744_v34  ;;  %v726_v37 = vadd.f32 %v725_v33, %v502_v35  ;;  %v745_v38 = vmul.f32 %v502_v35, %v502_v35  ;;  %v571_v39 = vpop.f32.mrf.mxu1 }
  0xee   :  { %v746_v40 = vmul.f32 %v571_v39, %v571_v39 }
  0xef   :  { %v760_v41 = vadd.f32 %v759_v36, %v745_v38  ;;  %v727_v42 = vadd.f32 %v726_v37, %v571_v39  ;;  %v573_v43 = vpop.f32.mrf.mxu1 }
  0xf0   :  { %v747_v46 = vmul.f32 %v573_v43, %v573_v43 }
  0xf1   :  { %v761_v44 = vadd.f32 %v760_v41, %v746_v40  ;;  %v728_v45 = vadd.f32 %v727_v42, %v573_v43 }
  0xf3   :  { %v762_v47 = vadd.f32 %v761_v44, %v747_v46 }
  0xf4   :  { %v642_v48 = vpop.f32.mrf.mxu0 }
  0xf5   :  { %v729_v49 = vadd.f32 %v728_v45, %v642_v48  ;;  %v748_v50 = vmul.f32 %v642_v48, %v642_v48 }
  0xf6   :  { %v644_v51 = vpop.f32.mrf.mxu0 }
  0xf7   :  { %v713_v52 = vpop.f32.mrf.mxu1  ;;  %v763_v53 = vadd.f32 %v762_v47, %v748_v50  ;;  %v730_v54 = vadd.f32 %v729_v49, %v644_v51  ;;  %v749_v55 = vmul.f32 %v644_v51, %v644_v51 }
  0xf8   :  { %v750_v56 = vmul.f32 %v713_v52, %v713_v52 }
  0xf9   :  { %v764_v57 = vadd.f32 %v763_v53, %v749_v55  ;;  %v731_v58 = vadd.f32 %v730_v54, %v713_v52  ;;  %v715_v59 = vpop.f32.mrf.mxu1 }
  0xfa   :  { %v751_v62 = vmul.f32 %v715_v59, %v715_v59 }
  0xfb   :  { %v732_v60 = vadd.f32 %v731_v58, %v715_v59  ;;  %v765_v61 = vadd.f32 %v764_v57, %v750_v56 }
  0xfd   :  { %733 = vadd.xlane.f32.xlu0 %v732_v60  ;;  %v766_v63 = vadd.f32 %v765_v61, %v751_v62 }
 0x101   :  { %767 = vadd.xlane.f32.xlu0 %v766_v63 }
 0x186   :  { %v734_v2 = vpop.xlane.xlu0 %733 }
 0x187   :  { %v735_v6 = vmul.f32 0.0006377551, %v734_v2 }
 0x189   :  { %v770_v8 = vmul.f32 %v735_v6, %v735_v6 }
 0x18a   :  { %v768_v7 = vpop.xlane.xlu0 %767 }
 0x18b   :  { %v769_v0 = vmul.f32 0.0006377551, %v768_v7 }
 0x18d   :  { %v771_v10 = vsub.f32 %v769_v0, %v770_v8 }
 0x18f   :  { %v773_v11 = vadd.f32 1e-05, %v771_v10 }
 0x191   :  { %900 = vrsqrt.f32 %v773_v11 }
 0x19e   :  { %v901_v13 = vpop.eup %900 }
 0x19f   :  { %v775_v14 = vmul.f32 %v901_v13, %v772_v12 }
 0x1a1   :  { %781 = vperm.xlu1 %898, %v775_v14   ;;  %v777_v17 = vmul.f32 %v775_v14, %v735_v6 }
 0x1a3   :  { %v778_v18 = vsub.f32 %v776_v15, %v777_v17 }
 0x1a5   :  { %802 = vperm.xlu1 %898, %v778_v18  }
 0x21c   :  { %v782_v20 = vpop.permute.xlu1 %781 }
 0x21d   :  { %v784_v21 = vmul.f32 %v782_v20, %v1025_v3  ;;  %v785_v22 = vmul.f32 %v782_v20, %v1027_v4  ;;  %v786_v24 = vmul.f32 %v782_v20, %v1029_v5  ;;  %v787_v25 = vmul.f32 %v782_v20, %v1039_v9 }
 0x21e   :  { %v788_v26 = vmul.f32 %v782_v20, %v1045_v16  ;;  %v789_v28 = vmul.f32 %v782_v20, %v1050_v19  ;;  %v790_v29 = vmul.f32 %v782_v20, %v1055_v23  ;;  %v791_v30 = vmul.f32 %v782_v20, %v1060_v27 }
 0x21f   :  { %v792_v31 = vmul.f32 %v782_v20, %v500_v32  ;;  %v793_v33 = vmul.f32 %v782_v20, %v502_v35  ;;  %v794_v34 = vmul.f32 %v782_v20, %v571_v39  ;;  %v795_v36 = vmul.f32 %v782_v20, %v573_v43 }
 0x220   :  { %v803_v37 = vpop.permute.xlu1 %802  ;;  %v796_v3 = vmul.f32 %v782_v20, %v642_v48  ;;  %v797_v38 = vmul.f32 %v782_v20, %v644_v51  ;;  %v798_v4 = vmul.f32 %v782_v20, %v713_v52  ;;  %v799_v40 = vmul.f32 %v782_v20, %v715_v59 }
 0x221   :  { %v805_v5 = vadd.f32 %v803_v37, %v784_v21  ;;  %v806_v41 = vadd.f32 %v803_v37, %v785_v22  ;;  %v807_v9 = vadd.f32 %v803_v37, %v786_v24  ;;  %v808_v42 = vadd.f32 %v803_v37, %v787_v25 }
 0x222   :  { %v809_v16 = vadd.f32 %v803_v37, %v788_v26  ;;  %v810_v44 = vadd.f32 %v803_v37, %v789_v28  ;;  %v811_v19 = vadd.f32 %v803_v37, %v790_v29  ;;  %v812_v45 = vadd.f32 %v803_v37, %v791_v30 }
 0x223   :  { %v813_v23 = vadd.f32 %v803_v37, %v792_v31  ;;  %v814_v46 = vadd.f32 %v803_v37, %v793_v33  ;;  %v815_v27 = vadd.f32 %v803_v37, %v794_v34  ;;  %v816_v32 = vadd.f32 %v803_v37, %v795_v36 }
 0x224   :  { %v817_v35 = vadd.f32 %v803_v37, %v796_v3  ;;  %v818_v39 = vadd.f32 %v803_v37, %v797_v38  ;;  %v819_v43 = vadd.f32 %v803_v37, %v798_v4  ;;  %v820_v47 = vadd.f32 %v803_v37, %v799_v40 }
 0x225   :  { %v821_v48 = vmax.f32 %v805_v5, 0.0  ;;  %v822_v49 = vmax.f32 %v806_v41, 0.0  ;;  %v823_v50 = vmax.f32 %v807_v9, 0.0  ;;  %v824_v51 = vmax.f32 %v808_v42, 0.0 }
 0x226   :  { %v825_v52 = vmax.f32 %v809_v16, 0.0  ;;  %v826_v53 = vmax.f32 %v810_v44, 0.0  ;;  %v827_v54 = vmax.f32 %v811_v19, 0.0  ;;  %v828_v55 = vmax.f32 %v812_v45, 0.0 }
 0x227   :  { %v829_v56 = vmax.f32 %v813_v23, 0.0  ;;  %v830_v57 = vmax.f32 %v814_v46, 0.0  ;;  %v831_v58 = vmax.f32 %v815_v27, 0.0  ;;  %v832_v59 = vmax.f32 %v816_v32, 0.0 }
 0x228   :  { %v833_v60 = vmax.f32 %v817_v35, 0.0  ;;  %v834_v61 = vmax.f32 %v818_v39, 0.0  ;;  %v835_v62 = vmax.f32 %v819_v43, 0.0  ;;  %v836_v63 = vmax.f32 %v820_v47, 0.0 }
 0x229   :  { %v837_v1 = vmax.f32 %v821_v48, %v825_v52  ;;  %v838_v2 = vmax.f32 %v822_v49, %v826_v53  ;;  %v839_v6 = vmax.f32 %v823_v50, %v827_v54  ;;  %v840_v7 = vmax.f32 %v824_v51, %v828_v55 }
 0x22a   :  { %v841_v8 = vmax.f32 %v829_v56, %v833_v60  ;;  %v842_v0 = vmax.f32 %v830_v57, %v834_v61  ;;  %v843_v10 = vmax.f32 %v831_v58, %v835_v62  ;;  %v844_v11 = vmax.f32 %v832_v59, %v836_v63 }
 0x22c   :  { %v845_v12 = vmax.f32 %v837_v1, %v841_v8  ;;  %v846_v13 = vmax.f32 %v838_v2, %v842_v0  ;;  %v847_v14 = vmax.f32 %v839_v6, %v843_v10  ;;  %v848_v15 = vmax.f32 %v840_v7, %v844_v11 }
 0x22e   :  { %849 = vst [vmem:[#allocation5] sm:$0xff] %v845_v12  ;;  %850 = vst [vmem:[#allocation5 + $0x8] sm:$0xff] %v846_v13 }
 0x22f   :  { %851 = vst [vmem:[#allocation5 + $0x10] sm:$0xff] %v847_v14  ;;  %852 = vst [vmem:[#allocation5 + $0x18] sm:$0xff] %v848_v15 }
 0x230   :  { %933 = shalt.err (!%p930_p9)
}
 0x231   :  { %862 = dma.vmem_to_hbm [thread:$0]  %s860_s3, 512, %s1086_s4, [#allocation4]  }
 0x232   :  { %944 = dma.done.wait [#allocation4], 512  }
 0x233   :  { %945 = vsyncadd [#allocation4], 4294966784 }
 0x234   :  { %866 = vsyncpa [#allocation3], 1 }
 0x235   :  { %867 = vsyncpa [#allocation4], 1 }

</bundles_post_ra>
